<compile_context>
chip_gen: v7x
topology: tpu7x:2x2x1
jax: 0.10.0
libtpu: 0.0.40
codegen_flags: <defaults>
</compile_context>

<pallas_src>
import jax
import jax.numpy as jnp
from jax.experimental import pallas as pl
from jax.experimental.pallas import tpu as pltpu


def _round_up(x, m):
    return ((x + m - 1) // m) * m


def _vmem_capacity_bytes():
    """Physical per-core VMEM; conservative fallback = 64 MiB (v7x)."""
    try:
        info = pltpu.get_tpu_info()
        cap = getattr(info, "vmem_capacity_bytes", None)
        if cap:
            return int(cap)
    except Exception:
        pass
    return 64 * 1024 * 1024


def mlp_extractor_kernel(x_ref, w1_ref, b1_ref, w2_ref, b2_ref, o_ref):
    # Layer 1: bf16 MXU matmul with f32 accumulation, then f32 bias + tanh.
    x = x_ref[...].astype(jnp.bfloat16)
    h = jnp.dot(x, w1_ref[...], preferred_element_type=jnp.float32)
    h = jnp.tanh(h + b1_ref[...])
    # Layer 2: same pattern; intermediate cast to bf16 only for the MXU.
    y = jnp.dot(h.astype(jnp.bfloat16), w2_ref[...],
                preferred_element_type=jnp.float32)
    y = jnp.tanh(y + b2_ref[...])
    o_ref[...] = y.astype(o_ref.dtype)


def init_mlp_extractor_params(w1, b1, w2, b2):
    """One-time parameter prep (do NOT call per forward pass).

    w1: (input_dim, output_dim), b1: (output_dim,), w2: (output_dim, output_dim),
    b2: (output_dim,).  Weights are cast to bf16 for the MXU; biases kept f32.
    """
    return {
        "w1": jnp.asarray(w1, jnp.bfloat16),
        "b1": jnp.reshape(jnp.asarray(b1, jnp.float32), (1, -1)),
        "w2": jnp.asarray(w2, jnp.bfloat16),
        "b2": jnp.reshape(jnp.asarray(b2, jnp.float32), (1, -1)),
    }


def mlp_extractor(x, params, *, block_batch=None):
    """Fused forward pass of MlpExtractor.

    x      : (B, input_dim) float32 or bfloat16
    params : dict from init_mlp_extractor_params
    returns: (B, output_dim) float32
    """
    w1, b1, w2, b2 = params["w1"], params["b1"], params["w2"], params["b2"]
    B, in_dim = x.shape
    out_dim = w1.shape[1]

    vmem_cap = _vmem_capacity_bytes()
    if block_batch is None:
        # Bigger tiles on 128 MiB parts (v5e/v6e); conservative on v7x.
        block_batch = 1024 if vmem_cap >= 96 * 1024 * 1024 else 512

    # Balanced batch tiling: never pad almost a whole extra tile, and give
    # v7x's 2 TensorCores at least 2 tiles when the batch allows it.
    n_tiles = pl.cdiv(B, block_batch)
    if n_tiles < 2 and B >= 16:
        n_tiles = 2
    tb = _round_up(pl.cdiv(B, n_tiles), 8)
    B_p = _round_up(B, tb)

    if B_p != B:
        x = jnp.pad(x, ((0, B_p - B), (0, 0)))  # only a few rows, only when needed

    grid = (B_p // tb,)
    x_itemsize = jnp.dtype(x.dtype).itemsize

    # VMEM budget: double-buffered x/out tiles, 2x resident weights (Pallas
    # double-buffers inputs even with constant index_map), plus compute temps.
    tile_bytes = 2 * tb * in_dim * x_itemsize + 2 * tb * out_dim * 4
    weight_bytes = 2 * ((in_dim * out_dim + out_dim * out_dim) * 2
                        + 2 * out_dim * 4)
    compute_bytes = tb * in_dim * 2 + 3 * tb * out_dim * 4
    needed = tile_bytes + weight_bytes + compute_bytes
    vmem_bytes = int(min(int(0.80 * vmem_cap),
                         max(32 * 1024 * 1024, int(1.5 * needed))))

    cost = pl.CostEstimate(
        flops=2 * B_p * in_dim * out_dim + 2 * B_p * out_dim * out_dim,
        transcendentals=2 * B_p * out_dim,
        bytes_accessed=(B_p * in_dim * x_itemsize
                        + (in_dim * out_dim + out_dim * out_dim) * 2
                        + 2 * out_dim * 4
                        + B_p * out_dim * 4),
    )

    out = pl.pallas_call(
        mlp_extractor_kernel,
        out_shape=jax.ShapeDtypeStruct((B_p, out_dim), jnp.float32),
        grid_spec=pltpu.PrefetchScalarGridSpec(
            num_scalar_prefetch=0,
            grid=grid,
            in_specs=[
                pl.BlockSpec((tb, in_dim), lambda i: (i, 0)),        # x: batch-tiled
                pl.BlockSpec((in_dim, out_dim), lambda i: (0, 0)),   # w1: resident
                pl.BlockSpec((1, out_dim), lambda i: (0, 0)),        # b1: resident
                pl.BlockSpec((out_dim, out_dim), lambda i: (0, 0)),  # w2: resident
                pl.BlockSpec((1, out_dim), lambda i: (0, 0)),        # b2: resident
            ],
            out_specs=pl.BlockSpec((tb, out_dim), lambda i: (i, 0)),
        ),
        compiler_params=pltpu.CompilerParams(
            dimension_semantics=("parallel",),  # batch tiles shard across v7x's 2 TCs
            vmem_limit_bytes=vmem_bytes,
        ),
        cost_estimate=cost,
    )(x, w1, b1, w2, b2)

    return out if B_p == B else out[:B]


if __name__ == "__main__":
    # Small, deterministic synthetic setup consistent with the module:
    # input_dim=32, output_dim=32, batch=8.
    batch, input_dim, output_dim = 8, 32, 32

    key = jax.random.PRNGKey(0)
    kx, kw1, kb1, kw2, kb2 = jax.random.split(key, 5)

    x = jax.random.normal(kx, (batch, input_dim), dtype=jnp.float32)

    # Deterministic parameter init (uniform, like PyTorch's default Linear init scale).
    lim1 = 1.0 / (input_dim ** 0.5)
    lim2 = 1.0 / (output_dim ** 0.5)
    w1 = jax.random.uniform(kw1, (input_dim, output_dim), jnp.float32, -lim1, lim1)
    b1 = jax.random.uniform(kb1, (output_dim,), jnp.float32, -lim1, lim1)
    w2 = jax.random.uniform(kw2, (output_dim, output_dim), jnp.float32, -lim2, lim2)
    b2 = jax.random.uniform(kb2, (output_dim,), jnp.float32, -lim2, lim2)

    # One-time param prep (bf16 cast, bias reshape) — hoisted out of the call.
    params = init_mlp_extractor_params(w1, b1, w2, b2)

    out = mlp_extractor(x, params)
    out = jax.block_until_ready(out)

    # Pure-JAX f32 reference (same math as the PyTorch module).  Tolerance is
    # relaxed vs. the f32 kernel because the matmuls now run on the bf16 MXU
    # (f32 accumulation); outputs are tanh-bounded so abs tolerance suffices.
    ref = jnp.tanh(jnp.tanh(x @ w1 + b1[None, :]) @ w2 + b2[None, :])
    assert out.shape == (batch, output_dim)
    assert jnp.allclose(out, ref, atol=2e-2, rtol=0.0), float(jnp.max(jnp.abs(out - ref)))

    print("KERNEL_OK")
</pallas_src>

<mosaic_0001>
module attributes {stable_mosaic.version = 11 : i64} {
  func.func @mlp_extractor_kernel(%arg0: i32, %arg1: memref<8x32xf32, #tpu.memory_space<vmem>>, %arg2: memref<32x32xbf16, #tpu.memory_space<vmem>>, %arg3: memref<1x32xf32, #tpu.memory_space<vmem>>, %arg4: memref<32x32xbf16, #tpu.memory_space<vmem>>, %arg5: memref<1x32xf32, #tpu.memory_space<vmem>>, %arg6: memref<8x32xf32, #tpu.memory_space<vmem>>) attributes {dimension_semantics = [#tpu.dimension_semantics<parallel>], iteration_bounds = array<i64: 1>, scalar_prefetch = 0 : i64, scratch_operands = 0 : i64, tpu.core_type = #tpu.core_type<tc>, window_params = [{transform_indices = @transform_0, window_bounds = array<i64: 8, 32>}, {pipeline_mode = #tpu.pipeline_mode<synchronous>, transform_indices = @transform_1, window_bounds = array<i64: 32, 32>}, {pipeline_mode = #tpu.pipeline_mode<synchronous>, transform_indices = @transform_2, window_bounds = array<i64: 1, 32>}, {pipeline_mode = #tpu.pipeline_mode<synchronous>, transform_indices = @transform_3, window_bounds = array<i64: 32, 32>}, {pipeline_mode = #tpu.pipeline_mode<synchronous>, transform_indices = @transform_4, window_bounds = array<i64: 1, 32>}, {transform_indices = @transform_5, window_bounds = array<i64: 8, 32>}]} {
    %c0 = arith.constant 0 : index
    %c0_0 = arith.constant 0 : index
    %0 = vector.load %arg1[%c0, %c0_0] : memref<8x32xf32, #tpu.memory_space<vmem>>, vector<8x32xf32>
    %1 = arith.truncf %0 : vector<8x32xf32> to vector<8x32xbf16>
    %c0_1 = arith.constant 0 : index
    %c0_2 = arith.constant 0 : index
    %2 = vector.load %arg2[%c0_1, %c0_2] : memref<32x32xbf16, #tpu.memory_space<vmem>>, vector<32x32xbf16>
    %cst = arith.constant dense<0.000000e+00> : vector<8x32xf32>
    %3 = tpu.matmul %1, %2, %cst {dimension_numbers = #tpu.dot_dimension_numbers<[1], [0], [0], [1], [0, 0, 1, 1], [], []>} : vector<8x32xbf16>, vector<32x32xbf16>, vector<8x32xf32> -> vector<8x32xf32>
    %c0_3 = arith.constant 0 : index
    %c0_4 = arith.constant 0 : index
    %4 = vector.load %arg3[%c0_3, %c0_4] : memref<1x32xf32, #tpu.memory_space<vmem>>, vector<1x32xf32>
    %5 = vector.broadcast %4 : vector<1x32xf32> to vector<8x32xf32>
    %6 = arith.addf %3, %5 : vector<8x32xf32>
    %7 = math.tanh %6 : vector<8x32xf32>
    %8 = arith.truncf %7 : vector<8x32xf32> to vector<8x32xbf16>
    %c0_5 = arith.constant 0 : index
    %c0_6 = arith.constant 0 : index
    %9 = vector.load %arg4[%c0_5, %c0_6] : memref<32x32xbf16, #tpu.memory_space<vmem>>, vector<32x32xbf16>
    %cst_7 = arith.constant dense<0.000000e+00> : vector<8x32xf32>
    %10 = tpu.matmul %8, %9, %cst_7 {dimension_numbers = #tpu.dot_dimension_numbers<[1], [0], [0], [1], [0, 0, 1, 1], [], []>} : vector<8x32xbf16>, vector<32x32xbf16>, vector<8x32xf32> -> vector<8x32xf32>
    %c0_8 = arith.constant 0 : index
    %c0_9 = arith.constant 0 : index
    %11 = vector.load %arg5[%c0_8, %c0_9] : memref<1x32xf32, #tpu.memory_space<vmem>>, vector<1x32xf32>
    %12 = vector.broadcast %11 : vector<1x32xf32> to vector<8x32xf32>
    %13 = arith.addf %10, %12 : vector<8x32xf32>
    %14 = math.tanh %13 : vector<8x32xf32>
    %c0_10 = arith.constant 0 : index
    %c0_11 = arith.constant 0 : index
    %15 = vector.load %arg6[%c0_10, %c0_11] : memref<8x32xf32, #tpu.memory_space<vmem>>, vector<8x32xf32>
    tpu.vector_store %arg6[%c0_10, %c0_11], %14 {strides = array<i32>} : memref<8x32xf32, #tpu.memory_space<vmem>>, vector<8x32xf32>,
    return
  }
  func.func @transform_0(%arg0: i32) -> (i32, i32) {
    %c0_i32 = arith.constant 0 : i32
    %c0_i32_0 = arith.constant 0 : i32
    return %arg0, %c0_i32 : i32, i32
  }
  func.func @transform_1(%arg0: i32) -> (i32, i32) {
    %c0_i32 = arith.constant 0 : i32
    %c0_i32_0 = arith.constant 0 : i32
    %c0_i32_1 = arith.constant 0 : i32
    return %c0_i32, %c0_i32_0 : i32, i32
  }
  func.func @transform_2(%arg0: i32) -> (i32, i32) {
    %c0_i32 = arith.constant 0 : i32
    %c0_i32_0 = arith.constant 0 : i32
    %c0_i32_1 = arith.constant 0 : i32
    return %c0_i32, %c0_i32_0 : i32, i32
  }
  func.func @transform_3(%arg0: i32) -> (i32, i32) {
    %c0_i32 = arith.constant 0 : i32
    %c0_i32_0 = arith.constant 0 : i32
    %c0_i32_1 = arith.constant 0 : i32
    return %c0_i32, %c0_i32_0 : i32, i32
  }
  func.func @transform_4(%arg0: i32) -> (i32, i32) {
    %c0_i32 = arith.constant 0 : i32
    %c0_i32_0 = arith.constant 0 : i32
    %c0_i32_1 = arith.constant 0 : i32
    return %c0_i32, %c0_i32_0 : i32, i32
  }
  func.func @transform_5(%arg0: i32) -> (i32, i32) {
    %c0_i32 = arith.constant 0 : i32
    %c0_i32_0 = arith.constant 0 : i32
    return %arg0, %c0_i32 : i32, i32
  }
}

</mosaic_0001>

<bundles_post_ra>
// kernel: tpu_custom_call.1
= control target key start
LH: loop header
LB: loop body
LE: loop exit
PB: predicated region body
PF: predicated region fallthrough
CT: control target
= control target key end

     0   :  { %10 = vsyncpa [#allocation3], 0  ;;  %s457_s0 = inlined_call_operand.hbm [shape: f32[8,32], index: 0, kind: input, shape index: {}]   ;;  %s458_s1 = inlined_call_operand.hbm [shape: bf16[32,32], index: 1, kind: input, shape index: {}]   ;;  %s459_s2 = inlined_call_operand.vmem [shape: f32[1,32], index: 2, kind: input, shape index: {}]   ;;  %s460_s3 = inlined_call_operand.hbm [shape: bf16[32,32], index: 3, kind: input, shape index: {}]   ;;  %s461_s4 = inlined_call_operand.vmem [shape: f32[1,32], index: 4, kind: input, shape index: {}]   ;;  %s462_s5 = inlined_call_operand.hbm [shape: f32[8,32], index: 5, kind: output, shape index: {}]  }
   0x1   :  { %11 = vsyncpa [#allocation6], 0 }
   0x2   :  { %12 = vsyncpa [#allocation4], 0  ;;  %s356_s18 = smov [#allocation5]   ;;  %s262_s22 = scalar_lea.hbm %s458_s1, 256 }
   0x3   :  { %s28_s19 = sshll.u32 %s356_s18, 4  ;;  %p263_p0 = scmp.ne.s32.totalorder %s458_s1, %s262_s22  ;;  %s29_s19 = int_to_ptr.vmem [resolvable:$true] %s28_s19 }
   0x4   :  { %p266_p1 = scmp.lt.u32.totalorder %s262_s22, %s458_s1 }
   0x6   :  { %p268_p2 = pnand %p266_p1, %p263_p0 }
   0x8   :  { %271 = shalt.err (!%p268_p2)
}
   0x9   :  { %s272_s27 = scalar_lea.vmem %s29_s19, 256  ;;  %p277_p4 = scmp.lt.s32.totalorder %s29_s19, %s29_s19 }
   0xa   :  { %p273_p3 = scmp.ne.s32.totalorder %s29_s19, %s272_s27  ;;  %p278_p5 = scmp.lt.s32.totalorder %s272_s27, %s272_s27 }
   0xc   :  { %p279_p6 = por %p278_p5, %p277_p4 }
   0xe   :  { %p280_p7 = pnand %p279_p6, %p273_p3 }
  0x10   :  { %283 = shalt.err (!%p280_p7)
}
  0x11   :  { %s357_s28 = smov 64   ;;  %s358_s29 = smov 4  }
  0x12   :  { %34 = dma.hbm_to_vmem [thread:$0]  %s458_s1, 256, %s29_s19, [#allocation6], %s357_s28, %s357_s28, %s358_s29  }
  0x13   :  { %s359_s7 = smov [#allocation2]   ;;  %s360_s9 = smov [#allocation7]  }
  0x14   :  { %s19_s8 = sshll.u32 %s359_s7, 4  ;;  %s42_s10 = sshll.u32 %s360_s9, 4  ;;  %s20_s8 = int_to_ptr.vmem [resolvable:$true] %s19_s8  ;;  %s43_s10 = int_to_ptr.vmem [resolvable:$true] %s42_s10 }
  0x15   :  { %s284_s13 = scalar_lea.hbm %s457_s0, 128 }
  0x16   :  { %p285_p8 = scmp.ne.s32.totalorder %s457_s0, %s284_s13  ;;  %p288_p9 = scmp.lt.u32.totalorder %s284_s13, %s457_s0 }
  0x18   :  { %p290_p10 = pnand %p288_p9, %p285_p8 }
  0x1a   :  { %293 = shalt.err (!%p290_p10)
}
  0x1b   :  { %s294_s1 = scalar_lea.vmem %s20_s8, 128  ;;  %p299_p12 = scmp.lt.s32.totalorder %s20_s8, %s20_s8 }
  0x1c   :  { %p295_p11 = scmp.ne.s32.totalorder %s20_s8, %s294_s1  ;;  %p300_p13 = scmp.lt.s32.totalorder %s294_s1, %s294_s1 }
  0x1e   :  { %p301_p0 = por %p300_p13, %p299_p12 }
  0x20   :  { %p302_p1 = pnand %p301_p0, %p295_p11 }
  0x22   :  { %305 = shalt.err (!%p302_p1)
}
  0x23   :  { %22 = dma.hbm_to_vmem [thread:$0]  %s457_s0, 128, %s20_s8, [#allocation3]  }
  0x24   :  { %s306_s22 = scalar_lea.hbm %s460_s3, 256 }
  0x25   :  { %p307_p2 = scmp.ne.s32.totalorder %s460_s3, %s306_s22  ;;  %p310_p3 = scmp.lt.u32.totalorder %s306_s22, %s460_s3 }
  0x27   :  { %p312_p4 = pnand %p310_p3, %p307_p2 }
  0x29   :  { %315 = shalt.err (!%p312_p4)
}
  0x2a   :  { %s316_s27 = scalar_lea.vmem %s43_s10, 256  ;;  %p321_p6 = scmp.lt.s32.totalorder %s43_s10, %s43_s10 }
  0x2b   :  { %p317_p5 = scmp.ne.s32.totalorder %s43_s10, %s316_s27  ;;  %p322_p7 = scmp.lt.s32.totalorder %s316_s27, %s316_s27 }
  0x2d   :  { %p323_p8 = por %p322_p7, %p321_p6 }
  0x2f   :  { %p324_p9 = pnand %p323_p8, %p317_p5 }
  0x31   :  { %327 = shalt.err (!%p324_p9)
}
  0x32   :  { %48 = dma.hbm_to_vmem [thread:$0]  %s460_s3, 256, %s43_s10, [#allocation6], %s357_s28, %s357_s28, %s358_s29  }
  0x33   :  { %350 = dma.done.wait [#allocation3], 128  }
  0x34   :  { %351 = vsyncadd [#allocation3], 4294967168 }
  0x35   :  { %352 = dma.done.wait [#allocation6], 512  }
  0x36   :  { %353 = vsyncadd [#allocation6], 4294966784  ;;  %v361_v0 = vmov 0.0   ;;  %vm362_vm0 = vmmov 0   ;;  %v254_v1 = vld [vmem:[#allocation5] sm:$0xff]   ;;  %v255_v2 = vld [vmem:[#allocation5 + $0x8] sm:$0xff]  }
  0x37   :  { %230 = vmatprep.subr.bf16.mxu0 %v361_v0  ;;  %234 = vmatprep.mubr.msk.bf16.mxu0 %vm362_vm0, %v361_v0  ;;  %v61_v3 = vld [vmem:[#allocation2] sm:$0xff]  ;;  %vm86_vm1 = vcmask 261120   ;;  %v256_v5 = vld [vmem:[#allocation7] sm:$0xff]  }
  0x38   :  { %238 = vmatprep.subr.bf16.mxu1 %v361_v0  ;;  %242 = vmatprep.mubr.msk.bf16.mxu1 %vm362_vm0, %v361_v0  ;;  %v62_v4 = vpack.c.bf16 %v61_v3, %v61_v3  ;;  %v257_v6 = vld [vmem:[#allocation7 + $0x8] sm:$0xff]  }
  0x39   :  { %231 = vmatpush3.bf16.msra.mxu0 %v254_v1  ;;  %239 = vmatpush3.bf16.msra.mxu1 %v256_v5  ;;  %v216_v7 = vld [vmem:[%s459_s2] ss:$0 sm:$0xff]  ;;  %s363_s2 = smov [#allocation8]  }
  0x3a   :  { %232 = vmatprep.subr.bf16.mxu0 %v361_v0  ;;  %240 = vmatprep.subr.bf16.mxu1 %v361_v0  ;;  %v220_v15 = vld [vmem:[%s461_s4] ss:$0 sm:$0xff]  ;;  %s206_s7 = sshll.u32 %s363_s2, 4  ;;  %s207_s7 = int_to_ptr.vmem [resolvable:$true] %s206_s7 }
  0x3b   :  { %s328_s8 = scalar_lea.vmem %s207_s7, 128  ;;  %p333_p11 = scmp.lt.s32.totalorder %s207_s7, %s207_s7 }
  0x3c   :  { %p329_p10 = scmp.ne.s32.totalorder %s207_s7, %s328_s8  ;;  %p334_p12 = scmp.lt.s32.totalorder %s328_s8, %s328_s8 }
  0x3d   :  { %233 = vmatpush3.bf16.msra.mxu0 %v255_v2  ;;  %241 = vmatpush3.bf16.msra.mxu1 %v257_v6 }
  0x3e   :  { %p335_p13 = por %p334_p12, %p333_p11 }
  0x40   :  { %235 = vmatmul.mubr.msk.bf16.vlgmr.msra.gmra.mrb[0].mxu0 %vm86_vm1, %v62_v4  ;;  %p336_p0 = pnand %p335_p13, %p329_p10 }
 0x113   :  { %v124_v8 = vpop.f32.mrb[0].mxu0 }
 0x114   :  { %v125_v9 = vadd.f32 %v216_v7, %v124_v8  ;;  %v236_v10 = vpop.f32.mrb[1].mxu0 }
 0x115   :  { %v127_v11 = vpop.f32.mrb[2].mxu0 }
 0x116   :  { %258 = vtanh.f32 %v125_v9  ;;  %v237_v12 = vpop.f32.mrb[3].mxu0 }
 0x120   :  { %v259_v13 = vpop.eup %258 }
 0x121   :  { %v131_v14 = vpack.c.bf16 %v259_v13, %v259_v13 }
 0x123   :  { %243 = vmatmul.mubr.msk.bf16.vlgmr.msra.gmra.mrb[0].mxu1 %vm86_vm1, %v131_v14 }
 0x1f6   :  { %v192_v16 = vpop.f32.mrb[0].mxu1 }
 0x1f7   :  { %v193_v17 = vadd.f32 %v220_v15, %v192_v16  ;;  %v244_v18 = vpop.f32.mrb[1].mxu1 }
 0x1f8   :  { %v195_v19 = vpop.f32.mrb[2].mxu1 }
 0x1f9   :  { %260 = vtanh.f32 %v193_v17  ;;  %v245_v20 = vpop.f32.mrb[3].mxu1 }
 0x203   :  { %v261_v21 = vpop.eup %260 }
 0x204   :  { %199 = vst.msk [vmem:[#allocation8] sm:$0xff] %vm86_vm1, %v261_v21 }
 0x205   :  { %339 = shalt.err (!%p336_p0)
}
 0x206   :  { %s340_s10 = scalar_lea.hbm %s462_s5, 128 }
 0x207   :  { %p341_p1 = scmp.ne.s32.totalorder %s462_s5, %s340_s10  ;;  %p344_p2 = scmp.lt.u32.totalorder %s340_s10, %s462_s5 }
 0x209   :  { %p346_p3 = pnand %p344_p2, %p341_p1 }
 0x20b   :  { %349 = shalt.err (!%p346_p3)
}
 0x20c   :  { %209 = dma.vmem_to_hbm [thread:$0]  %s207_s7, 128, %s462_s5, [#allocation4]  }
 0x20d   :  { %354 = dma.done.wait [#allocation4], 128  }
 0x20e   :  { %355 = vsyncadd [#allocation4], 4294967168 }
 0x20f   :  { %213 = vsyncpa [#allocation3], 1 }
 0x210   :  { %214 = vsyncpa [#allocation6], 1 }
 0x211   :  { %215 = vsyncpa [#allocation4], 1 }

</bundles_post_ra>
